<compile_context>
chip_gen: v6e
topology: v6e:2x2x1
jax: 0.10.0
libtpu: 0.0.40
codegen_flags: <defaults>
</compile_context>

<pallas_src>
import functools

import jax
import jax.numpy as jnp
import numpy as np
from jax.experimental import pallas as pl
from jax.experimental.pallas import tpu as pltpu


_NCORES = 2  # leading "parallel" grid axis (v7x has 2 TCs; harmless on v5e/v6e)


def _round_up(x, m):
    return ((x + m - 1) // m) * m


def _auto_tile(num_channels, itemsize, requested):
    """Pick a pixel-tile that keeps double-buffered score blocks well inside
    the default scoped-VMEM budget (conservative for v7x's 32 MiB default)."""
    budget = 12 * 1024 * 1024
    t = max(_round_up(requested, 128), 128)
    while t > 512 and 2 * num_channels * t * itemsize > budget:
        t //= 2
    return max(t, 128)


def _hist_kernel(scores_ref, labels_ref, hist_ref, *,
                 num_classes, hw, tile, chunks_per_core):
    """Accumulates the (n, n) confusion matrix for this core's pixel chunks.

    scores_ref: (1, C, T)  float  per-pixel class scores (pixels on lanes)
    labels_ref: (1, 1, T)  int32  per-pixel ground-truth labels
    hist_ref  : (1, n, n)  f32    this core's partial confusion matrix
    """
    core = pl.program_id(0)
    b = pl.program_id(1)
    p = pl.program_id(2)

    # First visit of this core's resident output block -> zero it.
    @pl.when((b == 0) & (p == 0))
    def _():
        hist_ref[...] = jnp.zeros_like(hist_ref)

    scores = scores_ref[0]            # (C, T)
    labels = labels_ref[0]            # (1, T)
    C, T = scores.shape
    n = num_classes

    # Ragged-tail / over-shoot mask: global pixel index within this image.
    chunk = core * chunks_per_core + p                      # unclamped chunk id
    pix = chunk * tile + jax.lax.broadcasted_iota(jnp.int32, (1, T), 1)
    valid = (pix < hw) & (labels >= 0) & (labels < n)       # (1, T)

    # argmax over the channel (sublane) axis, first-max semantics.
    ch_iota = jax.lax.broadcasted_iota(jnp.int32, (C, T), 0)
    mx = jnp.max(scores, axis=0, keepdims=True)                              # (1, T)
    pred = jnp.min(jnp.where(scores == mx, ch_iota, C), axis=0, keepdims=True)  # (1, T)

    # One-hots with pixels on lanes; bf16 is exact for 0/1.
    cls_iota = jax.lax.broadcasted_iota(jnp.int32, (n, T), 0)                # (n, T)
    oh_label = jnp.where((labels == cls_iota) & valid, 1.0, 0.0).astype(jnp.bfloat16)
    oh_pred = jnp.where(pred == cls_iota, 1.0, 0.0).astype(jnp.bfloat16)

    # hist[i, j] += sum_over_pixels onehot_label[i, pix] * onehot_pred[j, pix]
    hist_ref[0] += jax.lax.dot_general(
        oh_label, oh_pred,
        dimension_numbers=(((1,), (1,)), ((), ())),
        preferred_element_type=jnp.float32)


def _fbeta_from_hist(hist, beta):
    tp = jnp.diagonal(hist)
    fn = jnp.sum(hist, axis=1) - tp      # target == c, pred != c
    fp = jnp.sum(hist, axis=0) - tp      # pred == c, target != c
    b2 = jnp.float32(beta) ** 2
    num = (1.0 + b2) * tp
    den = (1.0 + b2) * tp + b2 * fn + fp
    safe_den = jnp.where(den > 0, den, 1.0)
    return jnp.where(den > 0, num / safe_den, 0.0).astype(jnp.float32)


def seg_fbeta_metric(preds_nchw, target_nhw, num_classes, beta=1.0, tile=4096):
    """JAX/Pallas equivalent of SegFBetaScoreMetric.forward for 4-D preds."""
    N, C, H, W = preds_nchw.shape
    HW = H * W
    n = num_classes

    # Free reshapes only -- no transpose, no upcast, no pad.
    scores = preds_nchw.reshape(N, C, HW)
    if not jnp.issubdtype(scores.dtype, jnp.floating):
        scores = scores.astype(jnp.float32)
    labels = target_nhw.reshape(N, 1, HW).astype(jnp.int32)

    T = min(_auto_tile(C, scores.dtype.itemsize, tile), _round_up(HW, 128))
    num_blocks = pl.cdiv(HW, T)
    cpc = pl.cdiv(num_blocks, _NCORES)   # pixel chunks per core
    last_block = num_blocks - 1

    def score_map(c, b, p):
        return (b, 0, jnp.minimum(c * cpc + p, last_block))

    def label_map(c, b, p):
        return (b, 0, jnp.minimum(c * cpc + p, last_block))

    def out_map(c, b, p):
        return (c, 0, 0)

    partials = pl.pallas_call(
        functools.partial(_hist_kernel, num_classes=n, hw=HW, tile=T,
                          chunks_per_core=cpc),
        out_shape=jax.ShapeDtypeStruct((_NCORES, n, n), jnp.float32),
        grid_spec=pltpu.PrefetchScalarGridSpec(
            num_scalar_prefetch=0,
            grid=(_NCORES, N, cpc),
            in_specs=[
                pl.BlockSpec((1, C, T), score_map),
                pl.BlockSpec((1, 1, T), label_map),
            ],
            out_specs=pl.BlockSpec((1, n, n), out_map),
        ),
        compiler_params=pltpu.CompilerParams(
            dimension_semantics=("parallel", "arbitrary", "arbitrary")),
    )(scores, labels)

    hist = jnp.sum(partials, axis=0)     # (n, n) combined confusion matrix
    return _fbeta_from_hist(hist, beta)


def _reference_fbeta(preds_nchw, target_nhw, num_classes, beta=1.0):
    """NumPy reference mirroring torchmetrics MulticlassFBetaScore(average=None)."""
    n = num_classes
    pred = np.argmax(np.asarray(preds_nchw), axis=1).reshape(-1)
    label = np.asarray(target_nhw).reshape(-1)
    k = (label >= 0) & (label < n)
    hist = np.bincount(n * label[k] + pred[k], minlength=n * n).reshape(n, n)
    hist = hist.astype(np.float64)
    tp = np.diag(hist)
    fn = hist.sum(axis=1) - tp
    fp = hist.sum(axis=0) - tp
    b2 = beta * beta
    num = (1.0 + b2) * tp
    den = (1.0 + b2) * tp + b2 * fn + fp
    out = np.where(den > 0, num / np.where(den > 0, den, 1.0), 0.0)
    return out.astype(np.float32)


if __name__ == "__main__":
    num_classes = 4
    N, C, H, W = 2, num_classes, 16, 16

    key = jax.random.PRNGKey(0)
    k1, k2 = jax.random.split(key)
    preds = jax.random.normal(k1, (N, C, H, W), dtype=jnp.float32)
    target = jax.random.randint(k2, (N, H, W), 0, num_classes, dtype=jnp.int32)

    fbeta = seg_fbeta_metric(preds, target, num_classes, beta=1.0)
    fbeta = jax.block_until_ready(fbeta)

    ref = _reference_fbeta(preds, target, num_classes, beta=1.0)
    if not np.allclose(np.asarray(fbeta), ref, rtol=1e-5, atol=1e-6):
        raise AssertionError(f"mismatch: pallas={np.asarray(fbeta)} ref={ref}")

    print("KERNEL_OK")
</pallas_src>

<mosaic_0001>
module attributes {stable_mosaic.version = 11 : i64} {
  func.func @_hist_kernel(%arg0: i32, %arg1: i32, %arg2: i32, %arg3: memref<1x4x256xf32, #tpu.memory_space<vmem>>, %arg4: memref<1x1x256xi32, #tpu.memory_space<vmem>>, %arg5: memref<1x4x4xf32, #tpu.memory_space<vmem>>) attributes {dimension_semantics = [#tpu.dimension_semantics<parallel>, #tpu.dimension_semantics<arbitrary>, #tpu.dimension_semantics<arbitrary>], iteration_bounds = array<i64: 2, 2, 1>, scalar_prefetch = 0 : i64, scratch_operands = 0 : i64, tpu.core_type = #tpu.core_type<tc>, window_params = [{transform_indices = @transform_0, window_bounds = array<i64: 1, 4, 256>}, {transform_indices = @transform_1, window_bounds = array<i64: 1, 1, 256>}, {transform_indices = @transform_2, window_bounds = array<i64: 1, 4, 4>}]} {
    %c0_i32 = arith.constant 0 : i32
    %0 = arith.cmpi eq, %arg1, %c0_i32 : i32
    %c0_i32_0 = arith.constant 0 : i32
    %1 = arith.cmpi eq, %arg2, %c0_i32_0 : i32
    %2 = arith.andi %0, %1 : i1
    %3 = arith.extui %2 : i1 to i32
    %c0_i32_1 = arith.constant 0 : i32
    %4 = arith.cmpi ne, %3, %c0_i32_1 : i32
    scf.if %4 {
      %cst_22 = arith.constant 0.000000e+00 : f32
      %54 = vector.broadcast %cst_22 : f32 to vector<1x4x4xf32>
      %c0_23 = arith.constant 0 : index
      %c0_24 = arith.constant 0 : index
      %c0_25 = arith.constant 0 : index
      %55 = vector.load %arg5[%c0_23, %c0_24, %c0_25] : memref<1x4x4xf32, #tpu.memory_space<vmem>>, vector<1x4x4xf32>
      tpu.vector_store %arg5[%c0_23, %c0_24, %c0_25], %54 {strides = array<i32>} : memref<1x4x4xf32, #tpu.memory_space<vmem>>, vector<1x4x4xf32>,
    } else {
    }
    %c0 = arith.constant 0 : index
    %c0_2 = arith.constant 0 : index
    %c0_3 = arith.constant 0 : index
    %5 = vector.load %arg3[%c0, %c0_2, %c0_3] : memref<1x4x256xf32, #tpu.memory_space<vmem>>, vector<1x4x256xf32>
    %6 = vector.shape_cast %5 : vector<1x4x256xf32> to vector<4x256xf32>
    %c0_4 = arith.constant 0 : index
    %c0_5 = arith.constant 0 : index
    %c0_6 = arith.constant 0 : index
    %7 = vector.load %arg4[%c0_4, %c0_5, %c0_6] : memref<1x1x256xi32, #tpu.memory_space<vmem>>, vector<1x1x256xi32>
    %8 = vector.shape_cast %7 : vector<1x1x256xi32> to vector<1x256xi32>
    %c1_i32 = arith.constant 1 : i32
    %9 = arith.muli %arg0, %c1_i32 : i32
    %10 = arith.addi %9, %arg2 : i32
    %c256_i32 = arith.constant 256 : i32
    %11 = arith.muli %10, %c256_i32 : i32
    %12 = tpu.iota {dimensions = array<i32: 1>} : vector<1x256xi32>
    %13 = vector.broadcast %11 : i32 to vector<1x256xi32>
    %14 = arith.addi %13, %12 : vector<1x256xi32>
    %c256_i32_7 = arith.constant 256 : i32
    %15 = vector.broadcast %c256_i32_7 : i32 to vector<1x256xi32>
    %16 = arith.cmpi slt, %14, %15 : vector<1x256xi32>
    %c0_i32_8 = arith.constant 0 : i32
    %17 = vector.broadcast %c0_i32_8 : i32 to vector<1x256xi32>
    %18 = arith.cmpi sge, %8, %17 : vector<1x256xi32>
    %19 = arith.andi %16, %18 : vector<1x256xi1>
    %c4_i32 = arith.constant 4 : i32
    %20 = vector.broadcast %c4_i32 : i32 to vector<1x256xi32>
    %21 = arith.cmpi slt, %8, %20 : vector<1x256xi32>
    %22 = arith.andi %19, %21 : vector<1x256xi1>
    %23 = tpu.iota {dimensions = array<i32: 0>} : vector<4x256xi32>
    %cst = arith.constant dense<0xFF800000> : vector<256xf32>
    %24 = vector.multi_reduction <maximumf>, %6, %cst [0] : vector<4x256xf32> to vector<256xf32>
    %25 = vector.shape_cast %24 : vector<256xf32> to vector<1x256xf32>
    %26 = vector.broadcast %25 : vector<1x256xf32> to vector<4x256xf32>
    %27 = arith.cmpf oeq, %6, %26 : vector<4x256xf32>
    %c4_i32_9 = arith.constant 4 : i32
    %28 = vector.broadcast %c4_i32_9 : i32 to vector<4x256xi32>
    %29 = arith.select %27, %23, %28 : vector<4x256xi1>, vector<4x256xi32>
    %cst_10 = arith.constant dense<2147483647> : vector<256xi32>
    %30 = vector.multi_reduction <minsi>, %29, %cst_10 [0] : vector<4x256xi32> to vector<256xi32>
    %31 = vector.shape_cast %30 : vector<256xi32> to vector<1x256xi32>
    %32 = tpu.iota {dimensions = array<i32: 0>} : vector<4x256xi32>
    %33 = vector.broadcast %8 : vector<1x256xi32> to vector<4x256xi32>
    %34 = arith.cmpi eq, %33, %32 : vector<4x256xi32>
    %35 = vector.broadcast %22 : vector<1x256xi1> to vector<4x256xi1>
    %36 = arith.andi %34, %35 : vector<4x256xi1>
    %cst_11 = arith.constant 1.000000e+00 : f32
    %cst_12 = arith.constant 0.000000e+00 : f32
    %37 = vector.broadcast %cst_11 : f32 to vector<4x256xf32>
    %38 = vector.broadcast %cst_12 : f32 to vector<4x256xf32>
    %39 = arith.select %36, %37, %38 : vector<4x256xi1>, vector<4x256xf32>
    %40 = arith.truncf %39 : vector<4x256xf32> to vector<4x256xbf16>
    %41 = vector.broadcast %31 : vector<1x256xi32> to vector<4x256xi32>
    %42 = arith.cmpi eq, %41, %32 : vector<4x256xi32>
    %cst_13 = arith.constant 1.000000e+00 : f32
    %cst_14 = arith.constant 0.000000e+00 : f32
    %43 = vector.broadcast %cst_13 : f32 to vector<4x256xf32>
    %44 = vector.broadcast %cst_14 : f32 to vector<4x256xf32>
    %45 = arith.select %42, %43, %44 : vector<4x256xi1>, vector<4x256xf32>
    %46 = arith.truncf %45 : vector<4x256xf32> to vector<4x256xbf16>
    %c0_15 = arith.constant 0 : index
    %c0_16 = arith.constant 0 : index
    %c0_17 = arith.constant 0 : index
    %47 = vector.load %arg5[%c0_15, %c0_16, %c0_17] : memref<1x4x4xf32, #tpu.memory_space<vmem>>, vector<1x4x4xf32>
    %48 = vector.shape_cast %47 : vector<1x4x4xf32> to vector<4x4xf32>
    %cst_18 = arith.constant dense<0.000000e+00> : vector<4x4xf32>
    %49 = tpu.matmul %40, %46, %cst_18 {dimension_numbers = #tpu.dot_dimension_numbers<[1], [1], [0], [0], [0, 0, 1, 0], [], []>} : vector<4x256xbf16>, vector<4x256xbf16>, vector<4x4xf32> -> vector<4x4xf32>
    %50 = arith.addf %48, %49 : vector<4x4xf32>
    %c0_19 = arith.constant 0 : index
    %c0_20 = arith.constant 0 : index
    %c0_21 = arith.constant 0 : index
    %51 = vector.load %arg5[%c0_19, %c0_20, %c0_21] : memref<1x4x4xf32, #tpu.memory_space<vmem>>, vector<1x4x4xf32>
    %52 = vector.shape_cast %51 : vector<1x4x4xf32> to vector<4x4xf32>
    %53 = vector.shape_cast %50 : vector<4x4xf32> to vector<1x4x4xf32>
    tpu.vector_store %arg5[%c0_19, %c0_20, %c0_21], %53 {strides = array<i32>} : memref<1x4x4xf32, #tpu.memory_space<vmem>>, vector<1x4x4xf32>,
    return
  }
  func.func @transform_0(%arg0: i32, %arg1: i32, %arg2: i32) -> (i32, i32, i32) {
    %c1_i32 = arith.constant 1 : i32
    %0 = arith.muli %arg0, %c1_i32 : i32
    %1 = arith.addi %0, %arg2 : i32
    %c0_i32 = arith.constant 0 : i32
    %2 = arith.minsi %1, %c0_i32 : i32
    %c0_i32_0 = arith.constant 0 : i32
    %c0_i32_1 = arith.constant 0 : i32
    return %arg1, %c0_i32_0, %2 : i32, i32, i32
  }
  func.func @transform_1(%arg0: i32, %arg1: i32, %arg2: i32) -> (i32, i32, i32) {
    %c1_i32 = arith.constant 1 : i32
    %0 = arith.muli %arg0, %c1_i32 : i32
    %1 = arith.addi %0, %arg2 : i32
    %c0_i32 = arith.constant 0 : i32
    %2 = arith.minsi %1, %c0_i32 : i32
    %c0_i32_0 = arith.constant 0 : i32
    %c0_i32_1 = arith.constant 0 : i32
    return %arg1, %c0_i32_0, %2 : i32, i32, i32
  }
  func.func @transform_2(%arg0: i32, %arg1: i32, %arg2: i32) -> (i32, i32, i32) {
    %c0_i32 = arith.constant 0 : i32
    %c0_i32_0 = arith.constant 0 : i32
    %c0_i32_1 = arith.constant 0 : i32
    return %arg0, %c0_i32, %c0_i32_0 : i32, i32, i32
  }
}

</mosaic_0001>

<bundles_post_ra>
// kernel: tpu_custom_call.1
= control target key start
LH: loop header
LB: loop body
LE: loop exit
PB: predicated region body
PF: predicated region fallthrough
CT: control target
= control target key end

     0   :  { %s1177_s0 = inlined_call_operand.hbm [shape: f32[2,4,256], index: 0, kind: input, shape index: {}]   ;;  %s1178_s1 = inlined_call_operand.hbm [shape: s32[2,1,256], index: 1, kind: input, shape index: {}]   ;;  %s1179_s2 = inlined_call_operand.hbm [shape: f32[2,4,4], index: 2, kind: output, shape index: {}]  }
   0x1   :  { %1185 = sst [smem:[#allocation15_spill]] %s1177_s0 }
   0x2   :  { %7 = vsyncpa [#allocation3], 0 }
   0x3   :  { %9 = vsyncpa [#allocation3 + $0x1], 0 }
   0x4   :  { %10 = vsyncpa [#allocation6], 0 }
   0x5   :  { %12 = vsyncpa [#allocation6 + $0x1], 0 }
   0x6   :  { %13 = vsyncpa [#allocation4], 0 }
   0x7   :  { %15 = vsyncpa [#allocation4 + $0x1], 0  ;;  %s908_s9 = smov 0   ;;  %s910_s10 = smov 0  }
   0x8   :  { %s912_s11 = smov 0   ;;  %s914_s12 = smov 0  }
   0x9   :  { %s916_s13 = smov 0   ;;  %s918_s14 = smov 0  }
   0xa   :  { %s920_s15 = smov 0   ;;  %s922_s16 = smov 0  }
   0xb   :  { %s924_s17 = smov 0   ;;  %s926_s18 = smov 0  }
   0xc   :  { %s928_s19 = smov 0  }
   0xd LB: > { %1186 = sst [smem:[#allocation11_spill]] %s876_s17  ;;  %s559_s20 = sadd.s32 4294967295, %s884_s19   ;;  %s884_s19 = sphi %s928_s19, %s21_s19   ;;  %s880_s18 = sphi %s926_s18, %s1204_s18   ;;  %s876_s17 = sphi %s924_s17, %s1203_s17   ;;  %s872_s16 = sphi %s922_s16, %s1202_s16   ;;  %s868_s15 = sphi %s920_s15, %s1201_s15   ;;  %s864_s14 = sphi %s918_s14, %s1210_s14   ;;  %s860_s13 = sphi %s916_s13, %s1209_s13   ;;  %s856_s12 = sphi %s914_s12, %s1208_s12   ;;  %s852_s11 = sphi %s912_s11, %s1207_s11   ;;  %s848_s10 = sphi %s910_s10, %s1206_s10   ;;  %s844_s9 = sphi %s908_s9, %s1205_s9  }
   0xe   : > { %1187 = sst [smem:[#allocation12_spill]] %s880_s18  ;;  %s560_s21 = sadd.s32 4294967294, %s884_s19  }
   0xf   : > { %s36_s22 = sadd.s32 1, %s876_s17  ;;  %s40_s23 = sadd.s32 1, %s880_s18 }
  0x10   : > { %p38_p0 = scmp.ge.s32.totalorder %s36_s22, 2  ;;  %s55_s24 = sadd.s32 1, %s864_s14 }
  0x11   : > { %p62_p1 = scmp.ne.s32.totalorder %s864_s14, %s860_s13  ;;  %p63_p3 = scmp.eq.s32.totalorder %s884_s19, 0 }
  0x12   : > { %s1212_s22 = smov (%p38_p0, %s36_s22), 0  ;;  %s1214_s23 = smov (!%p38_p0, %s40_s23), %s880_s18 }
  0x13   : > { %1188 = sst [smem:[#allocation13_spill]] %s1212_s22  ;;  %p42_p2 = scmp.ge.s32.totalorder %s1214_s23, 2 }
  0x14   : > { %s50_s25 = ssub.s32 %s876_s17, %s1212_s22  ;;  %p68_p4 = scmp.ne.s32.totalorder %s860_s13, %s856_s12 }
  0x15   : > { %s1216_s23 = smov (%p42_p2, %s1214_s23), 0  ;;  %p977_p5 = por %p63_p3, %p62_p1 }
  0x16   : > { %1189 = sst [smem:[#allocation14_spill]] %s1216_s23  ;;  %p69_p6 = scmp.eq.s32.totalorder %s559_s20, 0 }
  0x17   : > { %s112_s27 = ssub.s32 %s880_s18, %s1216_s23  ;;  %s115_s29 = sadd.s32 1, %s852_s11 }
  0x18   : > { %p983_p7 = por %p69_p6, %p68_p4  ;;  %p113_p8 = scmp.eq.s32.totalorder %s112_s27, 0 }
  0x19   : > { %p125_p9 = scmp.ne.s32.totalorder %s852_s11, %s848_s10  ;;  %p126_p10 = scmp.eq.s32.totalorder %s559_s20, 3 }
  0x1a   : > { %p131_p11 = scmp.ne.s32.totalorder %s848_s10, %s844_s9  ;;  %p53_p12 = scmp.eq.s32.totalorder %s50_s25, 0 }
  0x1b   : > { %p992_p13 = por %p126_p10, %p125_p9  ;;  %p132_p0 = scmp.eq.s32.totalorder %s560_s21, 3 }
  0x1c   : > { %s997_s3 = scalar_select %p113_p8, %s852_s11, %s115_s29  }
  0x1d   : > { %s1192_s30 = scalar_select %p992_p13, 1, 0 }
  0x1e   : > { %s1000_s4 = scalar_select %p53_p12, %s864_s14, %s55_s24  }
  0x1f   : > { %p607_p1 = scmp.lt.s32.totalorder %s884_s19, 4  ;;  %s1004_s5 = sand.u32 1, %s864_s14  }
  0x20   : > { %p1006_p2 = por %p132_p0, %p131_p11  ;;  %s563_s7 = sshll.u32 %s1004_s5, 3 }
  0x21   : > { %s156_s8 = scalar_lea.vmem [#allocation2], %s563_s7  ;;  %s840_s20 = sshll.u32 %s876_s17, 7 }
  0x22   : > { %s1193_s6 = scalar_select %p1006_p2, 1, 0 }
  0x23   : > { %s169_s12 = sshll.u32 %s156_s8, 4  ;;  %s1194_s0 = sld [smem:[#allocation15_spill]]  ;;  %s1012_s12 = int_to_ptr.vmem [resolvable:$true] %s169_s12 }
  0x24   : > { %p1019_p3 = pnand %p607_p1, %p977_p5  ;;  %s153_s29 = scalar_lea.sflag [#allocation3], %s1004_s5 }
  0x26   : > { %p704_p9 = pneg %p1019_p3 }
  0x29   : > { %s167_s24 = scalar_lea.hbm %s1194_s0, %s840_s20  ;;  %s707_s26 = scalar_lea.hbm %s1194_s0, 256 }
  0x2a   : > { %s702_s23 = scalar_lea.hbm %s167_s24, 128 }
  0x2b   : > { %p703_p8 = scmp.ne.s32.totalorder %s167_s24, %s702_s23  ;;  %p709_p5 = scmp.lt.s32.totalorder %s707_s26, %s702_s23 }
  0x2d   : > { %p705_p10 = pnand %p704_p9, %p703_p8 }
  0x2f   : > { %p706_p11 = pneg %p705_p10 }
  0x31   : > { %p711_p12 = pnand %p709_p5, %p706_p11 }
  0x33   : > { %714 = shalt.err (!%p711_p12)
}
  0x34   : > { %s715_s20 = scalar_lea.vmem %s1012_s12, 128  ;;  %s886_s25 = smov [#allocation2]  }
  0x35   : > { %p716_p0 = scmp.ne.s32.totalorder %s1012_s12, %s715_s20  ;;  %s720_s27 = sshll.u32 %s886_s25, 4  ;;  %s721_s27 = int_to_ptr.vmem [resolvable:$false] %s720_s27 }
  0x36   : > { %s722_s22 = scalar_lea.vmem %s721_s27, 256  ;;  %p723_p8 = scmp.lt.s32.totalorder %s1012_s12, %s721_s27 }
  0x37   : > { %p718_p1 = pnand %p716_p0, %p704_p9  ;;  %p724_p10 = scmp.lt.s32.totalorder %s722_s22, %s715_s20 }
  0x39   : > { %p719_p4 = pneg %p718_p1  ;;  %p725_p6 = por %p724_p10, %p723_p8 }
  0x3b   : > { %p726_p2 = pnand %p725_p6, %p719_p4 }
  0x3d   : > { %729 = shalt.err (!%p726_p2)
}
  0x3e   : > { %599 = dma.hbm_to_vmem [thread:$0]  (!%p1019_p3), %s167_s24, 128, %s1012_s12, %s153_s29  }
  0x3f   : > { %p1196_p11 = scmp.lt.s32.totalorder %s884_s19, 5  ;;  %p1197_p5 = scmp.ge.s32.totalorder %s884_s19, 1 }
  0x40   : > { %s567_s22 = sshll.u32 %s1004_s5, 1  ;;  %s841_s7 = sshll.u32 %s876_s17, 5 }
  0x41   : > { %p1047_p12 = pnand %p1197_p5, %p1196_p11  ;;  %s191_s20 = scalar_lea.hbm %s1178_s1, %s841_s7 }
  0x42   : > { %s180_s25 = scalar_lea.vmem [#allocation5], %s567_s22  ;;  %s177_s0 = scalar_lea.sflag [#allocation6], %s1004_s5 }
  0x43   : > { %s193_s27 = sshll.u32 %s180_s25, 4  ;;  %s730_s18 = scalar_lea.hbm %s191_s20, 32  ;;  %s194_s27 = int_to_ptr.vmem [resolvable:$true] %s193_s27 }
  0x44   : > { %p731_p2 = scmp.ne.s32.totalorder %s191_s20, %s730_s18  ;;  %s735_s29 = scalar_lea.hbm %s1178_s1, 64 }
  0x45   : > { %p737_p0 = scmp.lt.s32.totalorder %s735_s29, %s730_s18 }
  0x46   : > { %p733_p4 = pnand %p731_p2, %p704_p9 }
  0x48   : > { %p734_p6 = pneg %p733_p4 }
  0x4a   : > { %p739_p1 = pnand %p737_p0, %p734_p6 }
  0x4c   : > { %742 = shalt.err (!%p739_p1)
}
  0x4d   : > { %s743_s17 = scalar_lea.vmem %s194_s27, 32  ;;  %s887_s5 = smov [#allocation5]  }
  0x4e   : > { %p744_p8 = scmp.ne.s32.totalorder %s194_s27, %s743_s17  ;;  %s748_s22 = sshll.u32 %s887_s5, 4  ;;  %s749_s22 = int_to_ptr.vmem [resolvable:$false] %s748_s22 }
  0x4f   : > { %s750_s7 = scalar_lea.vmem %s749_s22, 64  ;;  %p751_p5 = scmp.lt.s32.totalorder %s194_s27, %s749_s22 }
  0x50   : > { %p746_p10 = pnand %p744_p8, %p704_p9  ;;  %p752_p2 = scmp.lt.s32.totalorder %s750_s7, %s743_s17 }
  0x52   : > { %p747_p11 = pneg %p746_p10  ;;  %p753_p4 = por %p752_p2, %p751_p5 }
  0x54   : > { %p754_p13 = pnand %p753_p4, %p747_p11 }
  0x56   : > { %757 = shalt.err (!%p754_p13)
}
  0x57   : > { %602 = dma.hbm_to_vmem [thread:$0]  (!%p1019_p3), %s191_s20, 32, %s194_s27, %s177_s0  }
  0x58   : > { %202 = sbr.rel (%p1047_p12) target bundleno = 358 (0x166), region = 28  ;;  %s204_s18 = sand.u32 (!%p1047_p12), 1, %s860_s13  }
  0x59   : > { %s572_s8 = sshll.u32 (!%p1047_p12), %s204_s18, 3  ;;  %s205_s26 = scalar_lea.sflag (!%p1047_p12), [#allocation3], %s204_s18 }
  0x5a   : > { %s208_s25 = scalar_lea.vmem (!%p1047_p12), [#allocation2], %s572_s8 }
  0x5d   : > { %829 = dma.done.wait (%p983_p7), %s205_s26, 128  }
  0x5e   : > { %831 = vsyncadd (%p983_p7), %s205_s26, 4294967168  ;;  %s573_s17 = sshll.u32 %s204_s18, 1  ;;  %s214_s12 = scalar_lea.sflag [#allocation6], %s204_s18 }
  0x5f   : > { %s217_s24 = scalar_lea.vmem [#allocation5], %s573_s17 }
  0x60   : > { %833 = dma.done.wait (%p983_p7), %s214_s12, 32  }
  0x61   : > { %835 = vsyncadd (%p983_p7), %s214_s12, 4294967264  ;;  %s240_s0 = sand.u32 1, %s848_s10   ;;  %p252_p13 = scmp.eq.s32.totalorder %s868_s15, 0 }
  0x62   : > { %s574_s21 = sshll.u32 %s240_s0, 2  ;;  %vm258_vm0 = vcmask (%p252_p13), 27648   ;;  %v888_v0 = vmov (%p252_p13), 0.0  }
  0x63   : > { %s1083_s23 = scalar_lea.vmem [#allocation7], %s574_s21  ;;  %257 = sbr.rel (!%p252_p13) target bundleno = 104 (0x68), region = 40 }
  0x64   : > { %259 = vst.msk [vmem:[%s1083_s23] sm:$0xf] (%p252_p13), %vm258_vm0, %v888_v0 }
  0x68 PF: > { %v260_v1 = vld [vmem:[%s208_s25] sm:$0xff]  ;;  %v264_v2 = vlaneseq  ;;  %vm305_vm1 = vcmask 1043456   ;;  %v889_v5 = vmov 839922192   ;;  %v1087_v7 = vld [vmem:[%s217_s24] sm:$0x3] }
  0x69   : > { %v303_v3 = vcombine.high %v260_v1, %v260_v1  ;;  %v306_v4 = vsel %vm305_vm1, %v260_v1, -inf  ;;  %v326_v6 = vunpack.c.l.s4 %v889_v5  ;;  %s576_s15 = sshll.u32 %s872_s16, 8  ;;  %vm272_vm2 = vcmp.ge.s32.totalorder %v1087_v7, 0  ;;  %s586_s28 = sshll.u32 %s872_s16, 6 }
  0x6a   : > { %v1090_v8 = vshrl.u32 %v264_v2, 7  ;;  %v307_v9 = vrot.slane %v306_v4, 4  ;;  %v265_v10 = vand.u32 127, %v264_v2  ;;  %v267_v12 = vstv %s576_s15  ;;  %s446_s20 = sshll.u32 %s1083_s23, 4  ;;  %s1113_s5 = scalar_lea.hbm %s1179_s2, %s586_s28  ;;  %s1115_s20 = int_to_ptr.vmem [resolvable:$true] %s446_s20 }
  0x6b   : > { %v313_v11 = vsel %vm305_vm1, %v303_v3, -inf  ;;  %vm286_vm3 = vcmp.lt.s32.totalorder %v1087_v7, 4  ;;  %v890_v16 = vmov 0   ;;  %v327_v23 = vunpack.c.0.s8 %v326_v6  ;;  %v388_v63 = vld [vmem:[%s1083_s23] sm:$0xf]  ;;  %s433_s22 = scalar_lea.sflag [#allocation4], %s240_s0 }
  0x6c   : > { %v308_v13 = vmax.f32 %v306_v4, %v307_v9  ;;  %v314_v14 = vrot.slane %v313_v11, 4  ;;  %v266_v15 = vadd.s32 128, %v265_v10  ;;  %v273_v17 = vsel %vm272_vm2, 1, %v890_v16  ;;  %s758_s16 = scalar_lea.vmem %s1115_s20, 64  ;;  %p1199_p3 = scmp.ne.s32.totalorder %s1192_s30, 0 }
  0x6d   : > { %v280_v18 = vsub.s32 1, %v1090_v8  ;;  %v287_v22 = vsel %vm286_vm3, 1, %v890_v16  ;;  %v330_v31 = vsub.s32 %v327_v23, %v1090_v8  ;;  %v276_v32 = vsub.s32 0, %v1090_v8  ;;  %p759_p7 = scmp.ne.s32.totalorder %s1115_s20, %s758_s16  ;;  %s892_s7 = smov [#allocation7]  }
  0x6e   : > { %v309_v19 = vrot.slane %v308_v13, 2  ;;  %v315_v20 = vmax.f32 %v313_v11, %v314_v14  ;;  %v269_v21 = vadd.s32 %v267_v12, %v266_v15  ;;  %v268_v40 = vadd.s32 %v267_v12, %v265_v10  ;;  %s762_s18 = sshll.u32 %s892_s7, 4  ;;  %s763_s18 = int_to_ptr.vmem [resolvable:$false] %s762_s18 }
  0x6f   : > { %v281_v24 = vrot.slane %v273_v17, %v280_v18  ;;  %v295_v27 = vrot.slane %v287_v22, %v280_v18  ;;  %v361_v28 = vrot.slane %v1087_v7, %v280_v18  ;;  %v331_v38 = vrot.slane %v1090_v8, %v330_v31  ;;  %p760_p9 = pnand %p759_p7, %p1199_p3  ;;  %s764_s8 = scalar_lea.vmem %s763_s18, 128 }
  0x70   : > { %v310_v25 = vmax.f32 %v308_v13, %v309_v19  ;;  %v316_v26 = vrot.slane %v315_v20, 2  ;;  %vm271_vm4 = vcmp.lt.s32.totalorder %v269_v21, 256  ;;  %v277_v41 = vrot.slane %v273_v17, %v276_v32  ;;  %p765_p6 = scmp.lt.s32.totalorder %s1115_s20, %s763_s18  ;;  %p766_p0 = scmp.lt.s32.totalorder %s764_s8, %s758_s16 }
  0x71   : > { %vm283_vm5 = vcmp.ne.s32.totalorder %v281_v24, 0  ;;  %vm297_vm7 = vcmp.ne.s32.totalorder %v295_v27, 0  ;;  %vm363_vm9 = vcmp.eq.s32.totalorder %v361_v28, %v1090_v8  ;;  %v891_v42 = vmov 1.0|1.0   ;;  %p761_p12 = pneg %p760_p9 }
  0x72   : > { %v311_v29 = vrot.slane %v310_v25, 1  ;;  %v317_v30 = vmax.f32 %v315_v20, %v316_v26  ;;  %vm285_vm6 = vmand %vm271_vm4, %vm283_vm5  ;;  %v291_v44 = vrot.slane %v287_v22, %v276_v32  ;;  %vm270_vm14 = vcmp.lt.s32.totalorder %v268_v40, 256  ;;  %p767_p1 = por %p766_p0, %p765_p6 }
  0x73   : > { %vm299_vm8 = vmand %vm285_vm6, %vm297_vm7  ;;  %vm282_vm15 = vcmp.ne.s32.totalorder %v277_v41, 0  ;;  %v357_v60 = vrot.slane %v1087_v7, %v276_v32 }
  0x74   : > { %v312_v33 = vmax.f32 %v310_v25, %v311_v29  ;;  %v318_v34 = vrot.slane %v317_v30, 1  ;;  %v365_v35 = vsel %vm299_vm8, 1, %v890_v16  ;;  %vm284_vm2 = vmand %vm270_vm14, %vm282_vm15  ;;  %vm296_vm3 = vcmp.ne.s32.totalorder %v291_v44, 0  ;;  %p768_p8 = pnand %p767_p1, %p761_p12 }
  0x75   : > { %v373_v36 = vrot.slane %v365_v35, %v276_v32  ;;  %vm298_vm5 = vmand %vm284_vm2, %vm296_vm3  ;;  %vm430_vm2 = vcmask 27648  }
  0x76   : > { %v319_v37 = vmax.f32 %v317_v30, %v318_v34  ;;  %v364_v56 = vsel %vm298_vm5, 1, %v890_v16 }
  0x77   : > { %vm375_vm10 = vcmp.eq.s32.totalorder %v373_v36, 1  ;;  %v369_v61 = vrot.slane %v364_v56, %v276_v32 }
  0x78   : > { %v322_v39 = vcombine.low %v312_v33, %v319_v37  ;;  %vm377_vm11 = vmand %vm363_vm9, %vm375_vm10 }
  0x79   : > { %vm581_vm12 = vmpackc.low %vm377_vm11, %vm377_vm11  ;;  %vm374_vm14 = vcmp.eq.s32.totalorder %v369_v61, 1 }
  0x7a   : > { %vm324_vm13 = vcmp.eq.f32.partialorder %v260_v1, %v322_v39  ;;  %582 = vmatprep.mubr.msk.bf16.mxu0 %vm581_vm12, %v891_v42 }
  0x7b   : > { %v332_v43 = vsel %vm324_vm13, %v331_v38, 4  ;;  %vm362_vm13 = vcmp.eq.s32.totalorder %v357_v60, %v1090_v8 }
  0x7c   : > { %v333_v45 = vcombine.high %v332_v43, %v332_v43  ;;  %v334_v46 = vsel %vm305_vm1, %v332_v43, 2147483647  ;;  %vm376_vm15 = vmand %vm362_vm13, %vm374_vm14 }
  0x7d   : > { %v335_v47 = vrot.slane %v334_v46, 4 }
  0x7e   : > { %v344_v48 = vsel %vm305_vm1, %v333_v45, 2147483647 }
  0x7f   : > { %v345_v49 = vrot.slane %v344_v48, 4  ;;  %vm336_vm0 = vcmp.lt.s32.totalorder %v334_v46, %v335_v47 }
  0x80   : > { %v337_v50 = vsel %vm336_vm0, %v334_v46, %v335_v47  ;;  %vm583_vm0 = vmpackc.low %vm376_vm15, %vm376_vm15 }
  0x81   : > { %vm346_vm4 = vcmp.lt.s32.totalorder %v344_v48, %v345_v49  ;;  %v338_v51 = vrot.slane %v337_v50, 2 }
  0x82   : > { %v347_v52 = vsel %vm346_vm4, %v344_v48, %v345_v49 }
  0x83   : > { %v348_v53 = vrot.slane %v347_v52, 2  ;;  %vm339_vm6 = vcmp.lt.s32.totalorder %v337_v50, %v338_v51 }
  0x84   : > { %v340_v54 = vsel %vm339_vm6, %v337_v50, %v338_v51 }
  0x85   : > { %vm349_vm7 = vcmp.lt.s32.totalorder %v347_v52, %v348_v53  ;;  %v341_v55 = vrot.slane %v340_v54, 1 }
  0x86   : > { %v350_v57 = vsel %vm349_vm7, %v347_v52, %v348_v53 }
  0x87   : > { %v351_v58 = vrot.slane %v350_v57, 1  ;;  %vm342_vm8 = vcmp.lt.s32.totalorder %v340_v54, %v341_v55 }
  0x88   : > { %v343_v59 = vsel %vm342_vm8, %v340_v54, %v341_v55 }
  0x89   : > { %vm352_vm1 = vcmp.lt.s32.totalorder %v350_v57, %v351_v58  ;;  %vm382_vm9 = vcmp.eq.s32.totalorder %v343_v59, %v1090_v8 }
  0x8a   : > { %v353_v62 = vsel %vm352_vm1, %v350_v57, %v351_v58  ;;  %vm579_vm11 = vmpackc.low %vm382_vm9, %vm382_vm9 }
  0x8b   : > { %vm383_vm10 = vcmp.eq.s32.totalorder %v353_v62, %v1090_v8 }
  0x8c   : > { %vm577_vm12 = vmpackc.low %vm383_vm10, %vm383_vm10 }
  0x8d   : > { %578 = vmatprep.subr.msk.bf16.mxu0 %vm577_vm12, %v891_v42 }
  0x8e   : > { %580 = vmatpush1.bf16.xpose.msk.msra.mxu0 %vm579_vm11, %v891_v42 }
  0x95   : > { %584 = vmatmul.mubr.msk.bf16.vlgmr.msra.gmra.mxu0 %vm583_vm0, %v891_v42 }
 0x155   : > { %v423_v0 = vpop.f32.mrf.mxu0 }
 0x156   : > { %v429_v1 = vadd.f32 %v423_v0, %v388_v63 }
 0x157   : > { %v425_v2 = vpop.f32.mrf.mxu0 }
 0x158   : > { %431 = vst.msk [vmem:[%s1083_s23] sm:$0xf] %vm430_vm2, %v429_v1 }
 0x159   : > { %v426_v3 = vpop.f32.mrf.mxu0 }
 0x15a   : > { %771 = shalt.err (!%p768_p8)
}
 0x15b   : > { %s772_s26 = scalar_lea.hbm %s1113_s5, 64  ;;  %s776_s12 = scalar_lea.hbm %s1179_s2, 128 }
 0x15c   : > { %p773_p10 = scmp.ne.s32.totalorder %s1113_s5, %s772_s26  ;;  %p777_p2 = scmp.lt.s32.totalorder %s1113_s5, %s1179_s2 }
 0x15d   : > { %p778_p4 = scmp.lt.s32.totalorder %s776_s12, %s772_s26 }
 0x15e   : > { %p774_p11 = pnand %p773_p10, %p1199_p3 }
 0x15f   : > { %p779_p13 = por %p778_p4, %p777_p2 }
 0x160   : > { %p775_p5 = pneg %p774_p11 }
 0x162   : > { %p780_p7 = pnand %p779_p13, %p775_p5 }
 0x164   : > { %783 = shalt.err (!%p780_p7)
}
 0x165   : > { %594 = dma.vmem_to_hbm [thread:$0]  (%p1199_p3), %s1115_s20, 64, %s1113_s5, %s433_s22   ;;  %v427_v4 = vpop.f32.mrf.mxu0 }
 0x166 PF: > { %p608_p9 = scmp.ge.s32.totalorder %s884_s19, 2  ;;  %s458_s21 = sand.u32 1, %s844_s9  }
 0x167   : > { %p1200_p12 = scmp.ne.s32.totalorder %s1193_s6, 0  ;;  %s459_s23 = scalar_lea.sflag [#allocation4], %s458_s21 }
 0x169   : > { %p604_p6 = pnand %p608_p9, %p1200_p12 }
 0x16b   : > { %p605_p0 = pneg %p604_p6 }
 0x16d   : > { %837 = dma.done.wait (%p605_p0), %s459_s23, 64  }
 0x16e   : > { %839 = vsyncadd (%p605_p0), %s459_s23, 4294967232  ;;  %s21_s19 = sadd.s32 1, %s884_s19   ;;  %s1201_s15 = sld [smem:[#allocation11_spill]] }
 0x16f   : > { %p18_p1 = scmp.ge.s32.totalorder %s21_s19, 6   ;;  %s1202_s16 = sld [smem:[#allocation12_spill]] }
 0x170   : > { %s1203_s17 = sld [smem:[#allocation13_spill]]  ;;  %s1205_s9 = smov %s848_s10 }
 0x171   : > { %s1204_s18 = sld [smem:[#allocation14_spill]]  ;;  %s1206_s10 = smov %s852_s11 }
 0x172   : > { %s1207_s11 = smov %s997_s3  ;;  %s1208_s12 = smov %s860_s13 }
 0x173   : > { %s1209_s13 = smov %s864_s14  ;;  %s1210_s14 = smov %s1000_s4 }
 0x174   :  { %20 = sbr.rel (!%p18_p1) target bundleno = 13 (0xd), region = 90 }
 0x179   :  { %464 = vsyncpa [#allocation3], 1 }
 0x17a   :  { %466 = vsyncpa [#allocation3 + $0x1], 1 }
 0x17b   :  { %467 = vsyncpa [#allocation6], 1 }
 0x17c   :  { %469 = vsyncpa [#allocation6 + $0x1], 1 }
 0x17d   :  { %470 = vsyncpa [#allocation4], 1 }
 0x17e   :  { %472 = vsyncpa [#allocation4 + $0x1], 1 }

</bundles_post_ra>
